<compile_context>
chip_gen: v7x
topology: tpu7x:2x2x1
jax: 0.10.0
libtpu: 0.0.40
codegen_flags: <defaults>
</compile_context>

<pallas_src>
import jax
import jax.numpy as jnp
import numpy as np
from jax import lax
from jax.experimental import pallas as pl
from jax.experimental.pallas import tpu as pltpu


def _round_up(x, m):
    return -(-x // m) * m


def _pick_block(Nb, Ho, Wo, Cin, x_tile_budget_bytes=3 << 20, max_rows=1024):
    """Pick (NB, TH) dividing (Nb, Ho): maximize matmul rows per tile under a VMEM budget."""
    best_nb, best_th, best_rows = 1, 1, 0
    for nb in range(1, Nb + 1):
        if Nb % nb:
            continue
        for th in range(1, Ho + 1):
            if Ho % th:
                continue
            rows = nb * th * Wo
            xbytes = nb * (2 * th) * Wo * (2 * Cin) * 4          # f32 input tile
            if rows <= max_rows and xbytes <= x_tile_budget_bytes and rows > best_rows:
                best_nb, best_th, best_rows = nb, th, rows
    return best_nb, best_th


# -----------------------------------------------------------------------------
# Kernel: fused patch-extraction + 2x(MXU dot) + bias + PReLU for one tile.
#   x_ref : (NB, 2*TH, Wo, 2*Cin) f32   raw input rows (W pairs folded into lanes)
#   w_ref : (2, 2*Cin, TN)        bf16  per-level hyper weights (axis 0 = k_h)
#   ba_ref: (2, TN)               f32   row 0 = bias (per level), row 1 = PReLU alpha
#   o_ref : (NB, TH, Wo, TN)      f32   NHWC output tile (lane-dense Cout)
# -----------------------------------------------------------------------------
def _downsample_kernel(x_ref, w_ref, ba_ref, o_ref):
    nb, th2, wo, k2 = x_ref.shape
    th = th2 // 2
    rows = nb * th * wo

    # Leading-dim reshape only: (NB, 2*TH, Wo, K2) -> (NB*TH, 2, Wo, K2); the two
    # entries of axis 1 are the even/odd input rows (k_h = 0 / 1) of one output row.
    x = x_ref[...].reshape(nb * th, 2, wo, k2)
    a0 = x[:, 0].reshape(rows, k2).astype(jnp.bfloat16)   # k_h = 0 patches
    a1 = x[:, 1].reshape(rows, k2).astype(jnp.bfloat16)   # k_h = 1 patches

    acc = jnp.dot(a0, w_ref[0], preferred_element_type=jnp.float32)
    acc = acc + jnp.dot(a1, w_ref[1], preferred_element_type=jnp.float32)

    ba = ba_ref[...]
    y = acc + ba[0:1, :]                                   # bias
    y = jnp.where(y >= 0.0, y, ba[1:2, :] * y)             # PReLU (per-channel alpha)
    o_ref[...] = y.reshape(o_ref.shape).astype(o_ref.dtype)


# -----------------------------------------------------------------------------
# NHWC fast path: x_nhwc (L, Nb, H, W, Cin) -> (L, Nb, Ho, Wo, Cout). No transposes.
# -----------------------------------------------------------------------------
@jax.jit
def downsample_block_forward(params, x_nhwc, levels):
    L, Nb, H, W, Cin = x_nhwc.shape
    Ho, Wo = H // 2, W // 2
    K2 = 2 * Cin
    Cout = params["fc_w"].size // (4 * Cin + 1)

    if H % 2 or W % 2:                       # VALID conv with k=2,s=2 drops ragged edge
        x_nhwc = x_nhwc[:, :, : 2 * Ho, : 2 * Wo, :]

    # Free row-major reshapes (no data movement): fold W pairs into lanes, fold (L, Nb).
    x3 = x_nhwc.reshape(L * Nb, 2 * Ho, Wo, K2)

    # ---- HyperConv: per-level (weight, bias) generated from the level scalar ----
    flat = params["fc_w"][None, :] * levels[:, None] + params["fc_b"][None, :]
    wlen = Cout * Cin * 4
    w = flat[:, :wlen].reshape(L, Cout, Cin, 2, 2)
    bias = flat[:, wlen:]                                           # (L, Cout)
    # B[l, kh, kw*Cin + cin, cout] = w[l, cout, cin, kh, kw]  (matches lane packing of x3)
    B = jnp.transpose(w, (0, 3, 4, 2, 1)).reshape(L, 2, K2, Cout)
    alpha = jnp.broadcast_to(params["alpha"][None, :], (L, Cout))
    ba = jnp.stack([bias, alpha], axis=1).astype(jnp.float32)       # (L, 2, Cout)

    # ---- pad Cout to a lane-dense multiple of 128 (weights/bias only: tiny) ----
    Cout_p = _round_up(Cout, 128)
    if Cout_p != Cout:
        B = jnp.pad(B, ((0, 0), (0, 0), (0, 0), (0, Cout_p - Cout)))
        ba = jnp.pad(ba, ((0, 0), (0, 0), (0, Cout_p - Cout)))
    B = B.astype(jnp.bfloat16)

    # ---- tiling ----
    TN = 256 if (Cout_p % 256 == 0 and Cout_p >= 256) else 128
    NB, TH = _pick_block(Nb, Ho, Wo, Cin)
    # Make sure dual-TensorCore chips (v7x) have >= 2 grid blocks to shard.
    if L * (Nb // NB) * (Ho // TH) * (Cout_p // TN) == 1 and TH > 1:
        for d in range(2, TH + 1):
            if TH % d == 0:
                TH //= d
                break
    nbb = Nb // NB
    grid = (L, nbb, Ho // TH, Cout_p // TN)

    out = pl.pallas_call(
        _downsample_kernel,
        out_shape=jax.ShapeDtypeStruct((L * Nb, Ho, Wo, Cout_p), jnp.float32),
        grid_spec=pltpu.PrefetchScalarGridSpec(
            num_scalar_prefetch=0,
            grid=grid,
            in_specs=[
                pl.BlockSpec((NB, 2 * TH, Wo, K2),
                             lambda l, b, h, n: (l * nbb + b, h, 0, 0)),   # raw input rows
                pl.BlockSpec((None, 2, K2, TN),
                             lambda l, b, h, n: (l, 0, 0, n)),             # per-level weights
                pl.BlockSpec((None, 2, TN),
                             lambda l, b, h, n: (l, 0, n)),                # bias + alpha
            ],
            out_specs=pl.BlockSpec((NB, TH, Wo, TN),
                                   lambda l, b, h, n: (l * nbb + b, h, 0, n)),
        ),
        compiler_params=pltpu.CompilerParams(
            dimension_semantics=("parallel", "parallel", "parallel", "parallel")),
    )(x3, B, ba)

    out = out.reshape(L, Nb, Ho, Wo, Cout_p)
    if Cout_p != Cout:
        out = out[..., :Cout]
    return out                                                       # NHWC


# -----------------------------------------------------------------------------
# PyTorch-parity wrappers (NCHW in / NCHW out). Layout conversion exactly once.
# -----------------------------------------------------------------------------
@jax.jit
def downsample_block_forward_nchw(params, x_stack, levels):
    """x_stack: (L, Nb, Cin, H, W) -> (L, Nb, Cout, Ho, Wo)."""
    x_nhwc = jnp.transpose(x_stack, (0, 1, 3, 4, 2))
    y = downsample_block_forward(params, x_nhwc, levels)
    # NOTE: prefer consuming the NHWC output of downsample_block_forward directly
    # downstream; this transpose exists only for PyTorch (NCHW) parity.
    return jnp.transpose(y, (0, 1, 4, 2, 3))


def downsample_block_apply(params, xs, levels):
    """List-in / list-out wrapper matching ModuleParallel semantics."""
    x_stack = jnp.stack(xs, axis=0)
    lv = jnp.asarray(levels, jnp.float32)
    y = downsample_block_forward_nchw(params, x_stack, lv)
    return [y[i] for i in range(y.shape[0])]


# -----------------------------------------------------------------------------
# Parameter init (HyperConv = nn.Linear(1, Cout*(Cin*k*k + 1)); PReLU default 0.25)
# -----------------------------------------------------------------------------
def init_downsample_block(key, cin, cout, k=2):
    n_out = cout * (cin * k * k + 1)
    k1, k2 = jax.random.split(key)
    std = 0.02 / (cin * k * k) ** 0.5
    return {
        "fc_w": jax.random.normal(k1, (n_out,), jnp.float32) * std,
        "fc_b": jax.random.normal(k2, (n_out,), jnp.float32) * std,
        "alpha": 0.25 * jnp.ones((cout,), jnp.float32),
    }


# -----------------------------------------------------------------------------
# Pure-JAX reference (f32, NCHW) for correctness.
# -----------------------------------------------------------------------------
def reference_forward(params, xs, levels):
    outs = []
    cin = xs[0].shape[1]
    cout = params["fc_w"].size // (4 * cin + 1)
    for x, lv in zip(xs, levels):
        flat = params["fc_w"] * lv + params["fc_b"]
        wlen = cout * cin * 4
        w = flat[:wlen].reshape(cout, cin, 2, 2)
        b = flat[wlen:]
        y = lax.conv_general_dilated(
            x, w, window_strides=(2, 2), padding="VALID",
            dimension_numbers=("NCHW", "OIHW", "NCHW"))
        y = y + b[None, :, None, None]
        a = params["alpha"][None, :, None, None]
        outs.append(jnp.where(y >= 0.0, y, a * y))
    return outs


# -----------------------------------------------------------------------------
if __name__ == "__main__":
    key = jax.random.PRNGKey(0)
    k_x, k_p = jax.random.split(key)

    # Small RDUNet-like down block: Cin=64 -> Cout=128, two noise levels.
    Nb, Cin, Cout, H, W = 2, 64, 128, 16, 16
    levels = [15.0, 25.0]

    params = init_downsample_block(k_p, Cin, Cout)
    xs = [jax.random.uniform(jax.random.fold_in(k_x, i), (Nb, Cin, H, W), jnp.float32)
          for i in range(len(levels))]

    # PyTorch-parity path (NCHW list in / out).
    outs = downsample_block_apply(params, xs, levels)
    outs = [jax.block_until_ready(o) for o in outs]
    assert all(o.shape == (Nb, Cout, H // 2, W // 2) for o in outs)
    assert all(bool(jnp.isfinite(o).all()) for o in outs)

    # NHWC fast path (no exit transpose) — same kernel, lane-dense output.
    x_nhwc = jnp.transpose(jnp.stack(xs, axis=0), (0, 1, 3, 4, 2))
    y_nhwc = jax.block_until_ready(
        downsample_block_forward(params, x_nhwc, jnp.asarray(levels, jnp.float32)))
    assert y_nhwc.shape == (len(levels), Nb, H // 2, W // 2, Cout)

    # Numerical check against a pure-JAX f32 reference (bf16 MXU operands => loose tol).
    refs = reference_forward(params, xs, levels)
    for o, r in zip(outs, refs):
        np.testing.assert_allclose(np.asarray(o), np.asarray(r), atol=3e-2, rtol=3e-2)
    for i, r in enumerate(refs):
        np.testing.assert_allclose(
            np.asarray(jnp.transpose(y_nhwc[i], (0, 3, 1, 2))), np.asarray(r),
            atol=3e-2, rtol=3e-2)

    print("KERNEL_OK")
</pallas_src>

<mosaic_0001>
module attributes {stable_mosaic.version = 11 : i64} {
  func.func @_downsample_kernel(%arg0: i32, %arg1: i32, %arg2: i32, %arg3: i32, %arg4: memref<2x16x8x128xf32, #tpu.memory_space<vmem>>, %arg5: memref<1x2x128x128xbf16, #tpu.memory_space<vmem>>, %arg6: memref<1x2x128xf32, #tpu.memory_space<vmem>>, %arg7: memref<2x8x8x128xf32, #tpu.memory_space<vmem>>) attributes {dimension_semantics = [#tpu.dimension_semantics<parallel>, #tpu.dimension_semantics<parallel>, #tpu.dimension_semantics<parallel>, #tpu.dimension_semantics<parallel>], iteration_bounds = array<i64: 2, 1, 1, 1>, scalar_prefetch = 0 : i64, scratch_operands = 0 : i64, tpu.core_type = #tpu.core_type<tc>, window_params = [{transform_indices = @transform_0, window_bounds = array<i64: 2, 16, 8, 128>}, {transform_indices = @transform_1, window_bounds = array<i64: 1, 2, 128, 128>}, {transform_indices = @transform_2, window_bounds = array<i64: 1, 2, 128>}, {transform_indices = @transform_3, window_bounds = array<i64: 2, 8, 8, 128>}]} {
    %c0 = arith.constant 0 : index
    %c0_0 = arith.constant 0 : index
    %c0_1 = arith.constant 0 : index
    %c0_2 = arith.constant 0 : index
    %0 = vector.load %arg4[%c0, %c0_0, %c0_1, %c0_2] : memref<2x16x8x128xf32, #tpu.memory_space<vmem>>, vector<2x16x8x128xf32>
    %1 = vector.shape_cast %0 : vector<2x16x8x128xf32> to vector<16x2x8x128xf32>
    %2 = vector.extract_strided_slice %1 {offsets = [0, 0, 0, 0], sizes = [16, 1, 8, 128], strides = [1, 1, 1, 1]} : vector<16x2x8x128xf32> to vector<16x1x8x128xf32>
    %3 = vector.shape_cast %2 : vector<16x1x8x128xf32> to vector<16x8x128xf32>
    %4 = vector.shape_cast %3 : vector<16x8x128xf32> to vector<128x128xf32>
    %5 = arith.truncf %4 : vector<128x128xf32> to vector<128x128xbf16>
    %6 = vector.extract_strided_slice %1 {offsets = [0, 1, 0, 0], sizes = [16, 1, 8, 128], strides = [1, 1, 1, 1]} : vector<16x2x8x128xf32> to vector<16x1x8x128xf32>
    %7 = vector.shape_cast %6 : vector<16x1x8x128xf32> to vector<16x8x128xf32>
    %8 = vector.shape_cast %7 : vector<16x8x128xf32> to vector<128x128xf32>
    %9 = arith.truncf %8 : vector<128x128xf32> to vector<128x128xbf16>
    %c0_3 = arith.constant 0 : index
    %c0_4 = arith.constant 0 : index
    %c0_5 = arith.constant 0 : index
    %c0_6 = arith.constant 0 : index
    %10 = vector.load %arg5[%c0_3, %c0_4, %c0_5, %c0_6] : memref<1x2x128x128xbf16, #tpu.memory_space<vmem>>, vector<1x1x128x128xbf16>
    %11 = vector.shape_cast %10 : vector<1x1x128x128xbf16> to vector<128x128xbf16>
    %cst = arith.constant dense<0.000000e+00> : vector<128x128xf32>
    %12 = tpu.matmul %5, %11, %cst {dimension_numbers = #tpu.dot_dimension_numbers<[1], [0], [0], [1], [0, 0, 1, 1], [], []>} : vector<128x128xbf16>, vector<128x128xbf16>, vector<128x128xf32> -> vector<128x128xf32>
    %c0_7 = arith.constant 0 : index
    %c1 = arith.constant 1 : index
    %c0_8 = arith.constant 0 : index
    %c0_9 = arith.constant 0 : index
    %13 = vector.load %arg5[%c0_7, %c1, %c0_8, %c0_9] : memref<1x2x128x128xbf16, #tpu.memory_space<vmem>>, vector<1x1x128x128xbf16>
    %14 = vector.shape_cast %13 : vector<1x1x128x128xbf16> to vector<128x128xbf16>
    %cst_10 = arith.constant dense<0.000000e+00> : vector<128x128xf32>
    %15 = tpu.matmul %9, %14, %cst_10 {dimension_numbers = #tpu.dot_dimension_numbers<[1], [0], [0], [1], [0, 0, 1, 1], [], []>} : vector<128x128xbf16>, vector<128x128xbf16>, vector<128x128xf32> -> vector<128x128xf32>
    %16 = arith.addf %12, %15 : vector<128x128xf32>
    %c0_11 = arith.constant 0 : index
    %c0_12 = arith.constant 0 : index
    %c0_13 = arith.constant 0 : index
    %17 = vector.load %arg6[%c0_11, %c0_12, %c0_13] : memref<1x2x128xf32, #tpu.memory_space<vmem>>, vector<1x2x128xf32>
    %18 = vector.shape_cast %17 : vector<1x2x128xf32> to vector<2x128xf32>
    %19 = vector.extract_strided_slice %18 {offsets = [0, 0], sizes = [1, 128], strides = [1, 1]} : vector<2x128xf32> to vector<1x128xf32>
    %20 = vector.broadcast %19 : vector<1x128xf32> to vector<128x128xf32>
    %21 = arith.addf %16, %20 : vector<128x128xf32>
    %cst_14 = arith.constant 0.000000e+00 : f32
    %22 = vector.broadcast %cst_14 : f32 to vector<128x128xf32>
    %23 = arith.cmpf oge, %21, %22 : vector<128x128xf32>
    %24 = vector.extract_strided_slice %18 {offsets = [1, 0], sizes = [1, 128], strides = [1, 1]} : vector<2x128xf32> to vector<1x128xf32>
    %25 = vector.broadcast %24 : vector<1x128xf32> to vector<128x128xf32>
    %26 = arith.mulf %25, %21 : vector<128x128xf32>
    %27 = arith.select %23, %21, %26 : vector<128x128xi1>, vector<128x128xf32>
    %28 = vector.shape_cast %27 : vector<128x128xf32> to vector<2x8x8x128xf32>
    %c0_15 = arith.constant 0 : index
    %c0_16 = arith.constant 0 : index
    %c0_17 = arith.constant 0 : index
    %c0_18 = arith.constant 0 : index
    %29 = vector.load %arg7[%c0_15, %c0_16, %c0_17, %c0_18] : memref<2x8x8x128xf32, #tpu.memory_space<vmem>>, vector<2x8x8x128xf32>
    tpu.vector_store %arg7[%c0_15, %c0_16, %c0_17, %c0_18], %28 {strides = array<i32>} : memref<2x8x8x128xf32, #tpu.memory_space<vmem>>, vector<2x8x8x128xf32>,
    return
  }
  func.func @transform_0(%arg0: i32, %arg1: i32, %arg2: i32, %arg3: i32) -> (i32, i32, i32, i32) {
    %c1_i32 = arith.constant 1 : i32
    %0 = arith.muli %arg0, %c1_i32 : i32
    %1 = arith.addi %0, %arg1 : i32
    %c0_i32 = arith.constant 0 : i32
    %c0_i32_0 = arith.constant 0 : i32
    %c0_i32_1 = arith.constant 0 : i32
    return %1, %arg2, %c0_i32, %c0_i32_0 : i32, i32, i32, i32
  }
  func.func @transform_1(%arg0: i32, %arg1: i32, %arg2: i32, %arg3: i32) -> (i32, i32, i32, i32) {
    %c0_i32 = arith.constant 0 : i32
    %c0_i32_0 = arith.constant 0 : i32
    %c0_i32_1 = arith.constant 0 : i32
    return %arg0, %c0_i32, %c0_i32_0, %arg3 : i32, i32, i32, i32
  }
  func.func @transform_2(%arg0: i32, %arg1: i32, %arg2: i32, %arg3: i32) -> (i32, i32, i32) {
    %c0_i32 = arith.constant 0 : i32
    %c0_i32_0 = arith.constant 0 : i32
    return %arg0, %c0_i32, %arg3 : i32, i32, i32
  }
  func.func @transform_3(%arg0: i32, %arg1: i32, %arg2: i32, %arg3: i32) -> (i32, i32, i32, i32) {
    %c1_i32 = arith.constant 1 : i32
    %0 = arith.muli %arg0, %c1_i32 : i32
    %1 = arith.addi %0, %arg1 : i32
    %c0_i32 = arith.constant 0 : i32
    %c0_i32_0 = arith.constant 0 : i32
    return %1, %arg2, %c0_i32, %arg3 : i32, i32, i32, i32
  }
}

</mosaic_0001>

<bundles_post_ra>
// kernel: downsample_block_forward.1
= control target key start
LH: loop header
LB: loop body
LE: loop exit
PB: predicated region body
PF: predicated region fallthrough
CT: control target
= control target key end

     0   :  { %8 = vsyncpa [#allocation3], 0  ;;  %s1470_s0 = inlined_call_operand.vmem [shape: f32[4,16,8,128], index: 0, kind: input, shape index: {}]   ;;  %s1471_s1 = inlined_call_operand.vmem [shape: bf16[2,2,128,128], index: 1, kind: input, shape index: {}]   ;;  %s1472_s2 = inlined_call_operand.vmem [shape: f32[2,2,128], index: 2, kind: input, shape index: {}]   ;;  %s1473_s3 = inlined_call_operand.hbm [shape: f32[4,8,8,128], index: 3, kind: output, shape index: {}]  }
   0x1   :  { %10 = vsyncpa [#allocation3 + $0x1], 0  ;;  %s1233_s12 = smov 0   ;;  %s1235_s13 = smov 0  }
   0x2   :  { %s1237_s14 = smov 0   ;;  %s1239_s15 = smov 0  }
   0x3   :  { %s1241_s16 = smov 0   ;;  %s1243_s17 = smov 0  }
   0x4 LB: > { %s891_s18 = sadd.s32 4294967295, %s1208_s17   ;;  %s892_s19 = sadd.s32 4294967294, %s1208_s17   ;;  %s1208_s17 = sphi %s1243_s17, %s16_s17   ;;  %s1204_s16 = sphi %s1241_s16, %s1480_s16   ;;  %s1200_s15 = sphi %s1239_s15, %s1479_s15   ;;  %s1196_s14 = sphi %s1237_s14, %s1478_s14   ;;  %s1192_s13 = sphi %s1235_s13, %s1477_s13   ;;  %s1188_s12 = sphi %s1233_s12, %s1476_s12  }
   0x5   : > { %s42_s20 = sadd.s32 1, %s1204_s16  ;;  %s141_s21 = sadd.s32 1, %s1196_s14 }
   0x6   : > { %p44_p0 = scmp.ge.s32.totalorder %s42_s20, 2  ;;  %p151_p1 = scmp.ne.s32.totalorder %s1196_s14, %s1192_s13 }
   0x7   : > { %p152_p2 = scmp.eq.s32.totalorder %s891_s18, 1  ;;  %p157_p3 = scmp.ne.s32.totalorder %s1192_s13, %s1188_s12 }
   0x8   : > { %s1482_s20 = smov (%p44_p0, %s42_s20), 0  ;;  %p158_p5 = scmp.eq.s32.totalorder %s892_s19, 1 }
   0x9   : > { %p1273_p4 = por %p152_p2, %p151_p1  ;;  %s134_s23 = ssub.s32 %s1204_s16, %s1482_s20 }
   0xa   : > { %p895_p6 = scmp.ge.s32.totalorder %s1208_s17, 1  ;;  %p139_p7 = scmp.eq.s32.totalorder %s134_s23, 0 }
   0xb   : > { %p1280_p8 = por %p158_p5, %p157_p3  ;;  %p214_p9 = scmp.lt.s32.totalorder %s1208_s17, 3 }
   0xc   : > { %s1286_s25 = scalar_select %p139_p7, %s1196_s14, %s141_s21  }
   0xd   : > { %p215_p10 = pnand %p895_p6, %p214_p9 }
   0xe   : > { %p273_p11 = scmp.lt.s32.totalorder (!%p215_p10), %s1200_s15, 1  ;;  %s897_s4 = sshll.u32 (!%p215_p10), %s1200_s15, 1 }
   0xf   : > { %218 = sbr.rel (%p215_p10) target bundleno = 321 (0x141), region = 32  ;;  %p262_p12 = scmp.lt.s32.totalorder (!%p215_p10), %s897_s4, 3 }
  0x10   : > { %s256_s19 = sand.u32 (!%p215_p10), 1, %s1192_s13  }
  0x11   : > { %s896_s21 = sshll.u32 (!%p215_p10), %s256_s19, 7 }
  0x12   : > { %s1370_s23 = scalar_lea.vmem (!%p215_p10), [#allocation2], %s896_s21 }
  0x16   : > { %s1290_s26 = scalar_select %p273_p11, %s1200_s15, 1 }
  0x17   : > { %s1484_s4 = smov (!%p262_p12, %s897_s4), 3 }
  0x18   : > { %s942_s27 = sshll.u32 %s1290_s26, 7  ;;  %s941_s5 = sshll.u32 %s1484_s4, 7 }
  0x19   : > { %s1296_s30 = scalar_lea.vmem %s1471_s1, %s942_s27  ;;  %s1312_s8 = scalar_lea.vmem %s1470_s0, %s941_s5 }
  0x1a   : > { %v1114_v0 = vld [vmem:[%s1296_s30 + $0x40] sm:$0xff]   ;;  %v1116_v2 = vld [vmem:[%s1296_s30 + $0x48] sm:$0xff]   ;;  %v1118_v4 = vld [vmem:[%s1296_s30 + $0x50] sm:$0xff]   ;;  %s902_s9 = sshll.u32 %s1290_s26, 1  ;;  %s944_s26 = sshll.u32 %s1200_s15, 11 }
  0x1b   : > { %v1115_v1 = vld [vmem:[%s1296_s30] sm:$0xff]   ;;  %977 = vmatprep.subr.bf16.mxu1 %v1114_v0  ;;  %v1117_v3 = vld [vmem:[%s1296_s30 + $0x8] sm:$0xff]   ;;  %v1119_v5 = vld [vmem:[%s1296_s30 + $0x10] sm:$0xff]   ;;  %s287_s18 = scalar_lea.vmem %s1472_s2, %s902_s9  ;;  %s771_s27 = sshll.u32 %s1370_s23, 4  ;;  %s1417_s27 = int_to_ptr.vmem [resolvable:$true] %s771_s27 }
  0x1c   : > { %1009 = vmatprep.subr.bf16.mxu0 %v1115_v1  ;;  %978 = vmatpush3.bf16.msra.mxu1 %v1114_v0  ;;  %v1120_v6 = vld [vmem:[%s1296_s30 + $0x58] sm:$0xff]   ;;  %v1122_v8 = vld [vmem:[%s1296_s30 + $0x60] sm:$0xff]   ;;  %v1124_v10 = vld [vmem:[%s1296_s30 + $0x68] sm:$0xff]   ;;  %v664_v0 = vlaneseq  ;;  %s1415_s29 = scalar_lea.hbm %s1473_s3, %s944_s26  ;;  %s1130_s4 = scalar_lea.vmem %s1417_s27, 2048 }
  0x1d   : > { %1010 = vmatpush3.bf16.msra.mxu0 %v1115_v1  ;;  %979 = vmatprep.subr.bf16.mxu1 %v1116_v2  ;;  %v1121_v7 = vld [vmem:[%s1296_s30 + $0x18] sm:$0xff]   ;;  %v1123_v9 = vld [vmem:[%s1296_s30 + $0x20] sm:$0xff]   ;;  %v293_v11 = vld [vmem:[%s1312_s8 + $0x8] sm:$0xff]  ;;  %p1131_p13 = scmp.ne.s32.totalorder %s1417_s27, %s1130_s4  ;;  %s1210_s5 = smov [#allocation2]  }
  0x1e   : > { %1011 = vmatprep.subr.bf16.mxu0 %v1117_v3  ;;  %v295_v12 = vld [vmem:[%s1312_s8 + $0x18] sm:$0xff]  ;;  %v292_v13 = vld [vmem:[%s1312_s8] sm:$0xff]  ;;  %v1125_v14 = vld [vmem:[%s1296_s30 + $0x28] sm:$0xff]   ;;  %v665_v1 = vshrl.u32 %v664_v0, 7  ;;  %s1134_s6 = sshll.u32 %s1210_s5, 4  ;;  %s1135_s6 = int_to_ptr.vmem [resolvable:$false] %s1134_s6 }
  0x1f   : > { %v332_v15 = vpack.c.bf16 %v295_v12, %v293_v11  ;;  %v294_v16 = vld [vmem:[%s1312_s8 + $0x10] sm:$0xff]  ;;  %v1128_v20 = vld [vmem:[%s1296_s30 + $0x78] sm:$0xff]   ;;  %v297_v22 = vld [vmem:[%s1312_s8 + $0x28] sm:$0xff]  ;;  %p1132_p0 = pnand %p1131_p13, %p1273_p4  ;;  %s1136_s7 = scalar_lea.vmem %s1135_s6, 4096 }
  0x20   : > { %980 = vmatpush3.bf16.msra.mxu1 %v1116_v2  ;;  %v324_v17 = vpack.c.bf16 %v294_v16, %v292_v13  ;;  %v1126_v18 = vld [vmem:[%s1296_s30 + $0x70] sm:$0xff]   ;;  %v1129_v21 = vld [vmem:[%s1296_s30 + $0x38] sm:$0xff]   ;;  %v296_v24 = vld [vmem:[%s1312_s8 + $0x20] sm:$0xff]  ;;  %v666_v2 = vsub.s32 0, %v665_v1  ;;  %p1137_p2 = scmp.lt.s32.totalorder %s1417_s27, %s1135_s6  ;;  %p1138_p3 = scmp.lt.s32.totalorder %s1136_s7, %s1130_s4 }
  0x21   : > { %1012 = vmatpush3.bf16.msra.mxu0 %v1117_v3  ;;  %981 = vmatprep.subr.bf16.mxu1 %v1118_v4  ;;  %v1127_v19 = vld [vmem:[%s1296_s30 + $0x30] sm:$0xff]   ;;  %v299_v23 = vld [vmem:[%s1312_s8 + $0x38] sm:$0xff]  ;;  %v301_v26 = vld [vmem:[%s1312_s8 + $0x48] sm:$0xff]  ;;  %s1424_s30 = scalar_lea.sflag [#allocation3], %s256_s19  ;;  %p1133_p1 = pneg %p1132_p0 }
  0x22   : > { %1013 = vmatprep.subr.bf16.mxu0 %v1119_v5  ;;  %993 = vmatprep.mubr.bf16.mxu1 %v332_v15  ;;  %v298_v25 = vld [vmem:[%s1312_s8 + $0x30] sm:$0xff]  ;;  %v303_v27 = vld [vmem:[%s1312_s8 + $0x58] sm:$0xff]  ;;  %v300_v28 = vld [vmem:[%s1312_s8 + $0x40] sm:$0xff]  ;;  %v333_v30 = vpack.c.bf16 %v299_v23, %v297_v22  ;;  %p1139_p5 = por %p1138_p3, %p1137_p2 }
  0x23   : > { %1025 = vmatprep.mubr.bf16.mxu0 %v324_v17  ;;  %v302_v29 = vld [vmem:[%s1312_s8 + $0x50] sm:$0xff]  ;;  %v325_v31 = vpack.c.bf16 %v298_v25, %v296_v24  ;;  %v334_v32 = vpack.c.bf16 %v303_v27, %v301_v26  ;;  %v305_v34 = vld [vmem:[%s1312_s8 + $0x68] sm:$0xff]  ;;  %v307_v35 = vld [vmem:[%s1312_s8 + $0x78] sm:$0xff] }
  0x24   : > { %982 = vmatpush3.bf16.msra.mxu1 %v1118_v4  ;;  %v326_v33 = vpack.c.bf16 %v302_v29, %v300_v28  ;;  %v304_v36 = vld [vmem:[%s1312_s8 + $0x60] sm:$0xff]  ;;  %v306_v37 = vld [vmem:[%s1312_s8 + $0x70] sm:$0xff]  ;;  %v309_v38 = vld [vmem:[%s1312_s8 + $0x88] sm:$0xff]  ;;  %v335_v42 = vpack.c.bf16 %v307_v35, %v305_v34  ;;  %v702_v4 = vsub.s32 1, %v665_v1  ;;  %p1140_p6 = pnand %p1139_p5, %p1133_p1 }
  0x25   : > { %1014 = vmatpush3.bf16.msra.mxu0 %v1119_v5  ;;  %983 = vmatprep.subr.bf16.mxu1 %v1120_v6  ;;  %v311_v39 = vld [vmem:[%s1312_s8 + $0x98] sm:$0xff]  ;;  %v308_v40 = vld [vmem:[%s1312_s8 + $0x80] sm:$0xff]  ;;  %v310_v41 = vld [vmem:[%s1312_s8 + $0x90] sm:$0xff]  ;;  %v327_v43 = vpack.c.bf16 %v306_v37, %v304_v36 }
  0x26   : > { %1015 = vmatprep.subr.bf16.mxu0 %v1121_v7  ;;  %v336_v44 = vpack.c.bf16 %v311_v39, %v309_v38  ;;  %v328_v45 = vpack.c.bf16 %v310_v41, %v308_v40  ;;  %v313_v46 = vld [vmem:[%s1312_s8 + $0xa8] sm:$0xff]  ;;  %v315_v47 = vld [vmem:[%s1312_s8 + $0xb8] sm:$0xff]  ;;  %v312_v48 = vld [vmem:[%s1312_s8 + $0xa0] sm:$0xff] }
  0x27   : > { %v314_v49 = vld [vmem:[%s1312_s8 + $0xb0] sm:$0xff]  ;;  %v317_v50 = vld [vmem:[%s1312_s8 + $0xc8] sm:$0xff]  ;;  %v319_v51 = vld [vmem:[%s1312_s8 + $0xd8] sm:$0xff]  ;;  %v337_v54 = vpack.c.bf16 %v315_v47, %v313_v46 }
  0x28   : > { %984 = vmatpush3.bf16.msra.mxu1 %v1120_v6  ;;  %v316_v52 = vld [vmem:[%s1312_s8 + $0xc0] sm:$0xff]  ;;  %v318_v53 = vld [vmem:[%s1312_s8 + $0xd0] sm:$0xff]  ;;  %v329_v55 = vpack.c.bf16 %v314_v49, %v312_v48  ;;  %v338_v56 = vpack.c.bf16 %v319_v51, %v317_v50  ;;  %v321_v58 = vld [vmem:[%s1312_s8 + $0xe8] sm:$0xff] }
  0x29   : > { %1016 = vmatpush3.bf16.msra.mxu0 %v1121_v7  ;;  %985 = vmatprep.subr.bf16.mxu1 %v1122_v8  ;;  %v330_v57 = vpack.c.bf16 %v318_v53, %v316_v52  ;;  %v323_v59 = vld [vmem:[%s1312_s8 + $0xf8] sm:$0xff]  ;;  %v320_v60 = vld [vmem:[%s1312_s8 + $0xe0] sm:$0xff]  ;;  %v322_v61 = vld [vmem:[%s1312_s8 + $0xf0] sm:$0xff] }
  0x2a   : > { %1017 = vmatprep.subr.bf16.mxu0 %v1123_v9  ;;  %v339_v62 = vpack.c.bf16 %v323_v59, %v321_v58  ;;  %v331_v63 = vpack.c.bf16 %v322_v61, %v320_v60  ;;  %v663_v3 = vld [vmem:[%s287_s18] sm:$0x3] }
  0x2b   : > { %v1357_v6 = vrot.slane %v663_v3, %v666_v2 }
  0x2c   : > { %986 = vmatpush3.bf16.msra.mxu1 %v1122_v8 }
  0x2d   : > { %1018 = vmatpush3.bf16.msra.mxu0 %v1123_v9  ;;  %987 = vmatprep.subr.bf16.mxu1 %v1124_v10 }
  0x2e   : > { %1019 = vmatprep.subr.bf16.mxu0 %v1125_v14 }
  0x30   : > { %988 = vmatpush3.bf16.msra.mxu1 %v1124_v10  ;;  %v1359_v10 = vrot.slane %v663_v3, %v702_v4 }
  0x31   : > { %1020 = vmatpush3.bf16.msra.mxu0 %v1125_v14  ;;  %989 = vmatprep.subr.bf16.mxu1 %v1126_v18 }
  0x32   : > { %1021 = vmatprep.subr.bf16.mxu0 %v1127_v19 }
  0x34   : > { %990 = vmatpush3.bf16.msra.mxu1 %v1126_v18 }
  0x35   : > { %1022 = vmatpush3.bf16.msra.mxu0 %v1127_v19  ;;  %991 = vmatprep.subr.bf16.mxu1 %v1128_v20 }
  0x36   : > { %1023 = vmatprep.subr.bf16.mxu0 %v1129_v21 }
  0x38   : > { %992 = vmatpush3.bf16.msra.mxu1 %v1128_v20 }
  0x39   : > { %1024 = vmatpush3.bf16.msra.mxu0 %v1129_v21 }
  0x3b   : > { %994 = vmatmul.mubr.bf16.vlgmr.msra.gmra.mrb[0].mxu1 %v333_v30 }
  0x3c   : > { %1026 = vmatmul.mubr.bf16.vlgmr.msra.gmra.mrb[0].mxu0 %v325_v31  ;;  %997 = vmatprep.mubr.bf16.mxu1 %v334_v32 }
  0x3d   : > { %1029 = vmatprep.mubr.bf16.mxu0 %v326_v33 }
  0x43   : > { %998 = vmatmul.mubr.bf16.gmra.mrb[4].mxu1 %v335_v42 }
  0x44   : > { %1030 = vmatmul.mubr.bf16.gmra.mrb[4].mxu0 %v327_v43  ;;  %1001 = vmatprep.mubr.bf16.mxu1 %v336_v44 }
  0x45   : > { %1033 = vmatprep.mubr.bf16.mxu0 %v328_v45 }
  0x4b   : > { %1002 = vmatmul.mubr.bf16.gmra.mrb[8].mxu1 %v337_v54 }
  0x4c   : > { %1034 = vmatmul.mubr.bf16.gmra.mrb[8].mxu0 %v329_v55  ;;  %1005 = vmatprep.mubr.bf16.mxu1 %v338_v56 }
  0x4d   : > { %1037 = vmatprep.mubr.bf16.mxu0 %v330_v57 }
  0x53   : > { %1006 = vmatmul.mubr.bf16.gmra.mrb[12].mxu1 %v339_v62 }
  0x54   : > { %1038 = vmatmul.mubr.bf16.gmra.mrb[12].mxu0 %v331_v63 }
 0x10e   : > { %v995_v5 = vpop.f32.mrb[0].mxu1 }
 0x10f   : > { %v1027_v7 = vpop.f32.mrb[0].mxu0  ;;  %v455_v8 = vpop.f32.mrb[1].mxu1 }
 0x110   : > { %v609_v9 = vadd.f32 %v1027_v7, %v995_v5  ;;  %v600_v11 = vpop.f32.mrb[1].mxu0  ;;  %v996_v12 = vpop.f32.mrb[2].mxu1 }
 0x111   : > { %v601_v13 = vadd.f32 %v600_v11, %v455_v8  ;;  %v1028_v14 = vpop.f32.mrb[2].mxu0  ;;  %v458_v15 = vpop.f32.mrb[3].mxu1 }
 0x112   : > { %v670_v16 = vadd.f32 %v1357_v6, %v609_v9  ;;  %v612_v17 = vadd.f32 %v1028_v14, %v996_v12  ;;  %v603_v18 = vpop.f32.mrb[3].mxu0 }
 0x113   : > { %v668_v19 = vadd.f32 %v1357_v6, %v601_v13  ;;  %v604_v20 = vadd.f32 %v603_v18, %v458_v15 }
 0x114   : > { %vm686_vm0 = vcmp.ge.f32.partialorder %v670_v16, 0.0  ;;  %v706_v21 = vmul.f32 %v1359_v10, %v670_v16  ;;  %v671_v22 = vadd.f32 %v1357_v6, %v612_v17 }
 0x115   : > { %vm684_vm1 = vcmp.ge.f32.partialorder %v668_v19, 0.0  ;;  %v704_v23 = vmul.f32 %v1359_v10, %v668_v19  ;;  %v669_v24 = vadd.f32 %v1357_v6, %v604_v20 }
 0x116   : > { %v722_v25 = vsel %vm686_vm0, %v670_v16, %v706_v21  ;;  %vm687_vm2 = vcmp.ge.f32.partialorder %v671_v22, 0.0  ;;  %v707_v26 = vmul.f32 %v1359_v10, %v671_v22  ;;  %v999_v27 = vpop.f32.mrb[4].mxu1 }
 0x117   : > { %738 = vst [vmem:[%s1370_s23 + $0x10] sm:$0xff] %v722_v25  ;;  %v720_v28 = vsel %vm684_vm1, %v668_v19, %v704_v23  ;;  %vm685_vm3 = vcmp.ge.f32.partialorder %v669_v24, 0.0  ;;  %v705_v29 = vmul.f32 %v1359_v10, %v669_v24  ;;  %v1031_v30 = vpop.f32.mrb[4].mxu0  ;;  %v471_v31 = vpop.f32.mrb[5].mxu1 }
 0x118   : > { %736 = vst [vmem:[%s1370_s23] sm:$0xff] %v720_v28  ;;  %v723_v32 = vsel %vm687_vm2, %v671_v22, %v707_v26  ;;  %v625_v33 = vadd.f32 %v1031_v30, %v999_v27  ;;  %v616_v34 = vpop.f32.mrb[5].mxu0  ;;  %v1000_v35 = vpop.f32.mrb[6].mxu1 }
 0x119   : > { %739 = vst [vmem:[%s1370_s23 + $0x18] sm:$0xff] %v723_v32  ;;  %v721_v36 = vsel %vm685_vm3, %v669_v24, %v705_v29  ;;  %v617_v37 = vadd.f32 %v616_v34, %v471_v31  ;;  %v1032_v38 = vpop.f32.mrb[6].mxu0  ;;  %v474_v39 = vpop.f32.mrb[7].mxu1 }
 0x11a   : > { %737 = vst [vmem:[%s1370_s23 + $0x8] sm:$0xff] %v721_v36  ;;  %v674_v40 = vadd.f32 %v1357_v6, %v625_v33  ;;  %v628_v41 = vadd.f32 %v1032_v38, %v1000_v35  ;;  %v619_v42 = vpop.f32.mrb[7].mxu0 }
 0x11b   : > { %v672_v43 = vadd.f32 %v1357_v6, %v617_v37  ;;  %v620_v44 = vadd.f32 %v619_v42, %v474_v39 }
 0x11c   : > { %vm690_vm4 = vcmp.ge.f32.partialorder %v674_v40, 0.0  ;;  %v710_v45 = vmul.f32 %v1359_v10, %v674_v40  ;;  %v675_v46 = vadd.f32 %v1357_v6, %v628_v41 }
 0x11d   : > { %vm688_vm5 = vcmp.ge.f32.partialorder %v672_v43, 0.0  ;;  %v708_v47 = vmul.f32 %v1359_v10, %v672_v43  ;;  %v673_v48 = vadd.f32 %v1357_v6, %v620_v44 }
 0x11e   : > { %v726_v49 = vsel %vm690_vm4, %v674_v40, %v710_v45  ;;  %vm691_vm6 = vcmp.ge.f32.partialorder %v675_v46, 0.0  ;;  %v711_v50 = vmul.f32 %v1359_v10, %v675_v46  ;;  %v1003_v51 = vpop.f32.mrb[8].mxu1 }
 0x11f   : > { %742 = vst [vmem:[%s1370_s23 + $0x30] sm:$0xff] %v726_v49  ;;  %v724_v52 = vsel %vm688_vm5, %v672_v43, %v708_v47  ;;  %vm689_vm7 = vcmp.ge.f32.partialorder %v673_v48, 0.0  ;;  %v709_v53 = vmul.f32 %v1359_v10, %v673_v48  ;;  %v1035_v54 = vpop.f32.mrb[8].mxu0  ;;  %v487_v55 = vpop.f32.mrb[9].mxu1 }
 0x120   : > { %740 = vst [vmem:[%s1370_s23 + $0x20] sm:$0xff] %v724_v52  ;;  %v727_v56 = vsel %vm691_vm6, %v675_v46, %v711_v50  ;;  %v641_v57 = vadd.f32 %v1035_v54, %v1003_v51  ;;  %v632_v58 = vpop.f32.mrb[9].mxu0  ;;  %v1004_v59 = vpop.f32.mrb[10].mxu1 }
 0x121   : > { %743 = vst [vmem:[%s1370_s23 + $0x38] sm:$0xff] %v727_v56  ;;  %v725_v60 = vsel %vm689_vm7, %v673_v48, %v709_v53  ;;  %v633_v61 = vadd.f32 %v632_v58, %v487_v55  ;;  %v1036_v62 = vpop.f32.mrb[10].mxu0  ;;  %v490_v63 = vpop.f32.mrb[11].mxu1 }
 0x122   : > { %741 = vst [vmem:[%s1370_s23 + $0x28] sm:$0xff] %v725_v60  ;;  %v678_v0 = vadd.f32 %v1357_v6, %v641_v57  ;;  %v644_v1 = vadd.f32 %v1036_v62, %v1004_v59  ;;  %v635_v2 = vpop.f32.mrb[11].mxu0 }
 0x123   : > { %v676_v3 = vadd.f32 %v1357_v6, %v633_v61  ;;  %v636_v4 = vadd.f32 %v635_v2, %v490_v63 }
 0x124   : > { %vm694_vm8 = vcmp.ge.f32.partialorder %v678_v0, 0.0  ;;  %v714_v5 = vmul.f32 %v1359_v10, %v678_v0  ;;  %v679_v7 = vadd.f32 %v1357_v6, %v644_v1 }
 0x125   : > { %vm692_vm9 = vcmp.ge.f32.partialorder %v676_v3, 0.0  ;;  %v712_v8 = vmul.f32 %v1359_v10, %v676_v3  ;;  %v677_v9 = vadd.f32 %v1357_v6, %v636_v4 }
 0x126   : > { %v730_v11 = vsel %vm694_vm8, %v678_v0, %v714_v5  ;;  %vm695_vm10 = vcmp.ge.f32.partialorder %v679_v7, 0.0  ;;  %v715_v12 = vmul.f32 %v1359_v10, %v679_v7  ;;  %v1007_v13 = vpop.f32.mrb[12].mxu1 }
 0x127   : > { %746 = vst [vmem:[%s1370_s23 + $0x50] sm:$0xff] %v730_v11  ;;  %v728_v14 = vsel %vm692_vm9, %v676_v3, %v712_v8  ;;  %vm693_vm11 = vcmp.ge.f32.partialorder %v677_v9, 0.0  ;;  %v713_v15 = vmul.f32 %v1359_v10, %v677_v9  ;;  %v1039_v16 = vpop.f32.mrb[12].mxu0  ;;  %v503_v17 = vpop.f32.mrb[13].mxu1 }
 0x128   : > { %744 = vst [vmem:[%s1370_s23 + $0x40] sm:$0xff] %v728_v14  ;;  %v731_v18 = vsel %vm695_vm10, %v679_v7, %v715_v12  ;;  %v657_v19 = vadd.f32 %v1039_v16, %v1007_v13  ;;  %v648_v20 = vpop.f32.mrb[13].mxu0  ;;  %v1008_v21 = vpop.f32.mrb[14].mxu1 }
 0x129   : > { %747 = vst [vmem:[%s1370_s23 + $0x58] sm:$0xff] %v731_v18  ;;  %v729_v22 = vsel %vm693_vm11, %v677_v9, %v713_v15  ;;  %v649_v23 = vadd.f32 %v648_v20, %v503_v17  ;;  %v1040_v24 = vpop.f32.mrb[14].mxu0  ;;  %v506_v25 = vpop.f32.mrb[15].mxu1 }
 0x12a   : > { %745 = vst [vmem:[%s1370_s23 + $0x48] sm:$0xff] %v729_v22  ;;  %v682_v26 = vadd.f32 %v1357_v6, %v657_v19  ;;  %v660_v27 = vadd.f32 %v1040_v24, %v1008_v21  ;;  %v651_v28 = vpop.f32.mrb[15].mxu0 }
 0x12b   : > { %v680_v29 = vadd.f32 %v1357_v6, %v649_v23  ;;  %v652_v30 = vadd.f32 %v651_v28, %v506_v25 }
 0x12c   : > { %vm698_vm12 = vcmp.ge.f32.partialorder %v682_v26, 0.0  ;;  %v718_v31 = vmul.f32 %v1359_v10, %v682_v26  ;;  %v683_v32 = vadd.f32 %v1357_v6, %v660_v27 }
 0x12d   : > { %vm696_vm13 = vcmp.ge.f32.partialorder %v680_v29, 0.0  ;;  %v716_v33 = vmul.f32 %v1359_v10, %v680_v29  ;;  %v681_v34 = vadd.f32 %v1357_v6, %v652_v30 }
 0x12e   : > { %v734_v35 = vsel %vm698_vm12, %v682_v26, %v718_v31  ;;  %vm699_vm14 = vcmp.ge.f32.partialorder %v683_v32, 0.0  ;;  %v719_v36 = vmul.f32 %v1359_v10, %v683_v32 }
 0x12f   : > { %750 = vst [vmem:[%s1370_s23 + $0x70] sm:$0xff] %v734_v35  ;;  %v732_v37 = vsel %vm696_vm13, %v680_v29, %v716_v33  ;;  %vm697_vm15 = vcmp.ge.f32.partialorder %v681_v34, 0.0  ;;  %v717_v38 = vmul.f32 %v1359_v10, %v681_v34 }
 0x130   : > { %748 = vst [vmem:[%s1370_s23 + $0x60] sm:$0xff] %v732_v37  ;;  %v735_v6 = vsel %vm699_vm14, %v683_v32, %v719_v36 }
 0x131   : > { %751 = vst [vmem:[%s1370_s23 + $0x78] sm:$0xff] %v735_v6  ;;  %v733_v39 = vsel %vm697_vm15, %v681_v34, %v717_v38 }
 0x132   : > { %749 = vst [vmem:[%s1370_s23 + $0x68] sm:$0xff] %v733_v39 }
 0x133   : > { %1143 = shalt.err (!%p1140_p6)
}
 0x134   : > { %s1144_s8 = scalar_lea.hbm %s1415_s29, 2048  ;;  %s1148_s11 = scalar_lea.hbm %s1473_s3, 4096 }
 0x135   : > { %p1145_p7 = scmp.ne.s32.totalorder %s1415_s29, %s1144_s8  ;;  %p1149_p11 = scmp.lt.u32.totalorder %s1415_s29, %s1473_s3 }
 0x136   : > { %p1150_p12 = scmp.lt.u32.totalorder %s1148_s11, %s1144_s8  ;;  %p1152_p0 = scmp.lt.u32.totalorder %s1144_s8, %s1415_s29 }
 0x137   : > { %p1146_p9 = pnand %p1145_p7, %p1273_p4 }
 0x138   : > { %p1151_p13 = por %p1150_p12, %p1149_p11 }
 0x139   : > { %p1147_p10 = pneg %p1146_p9 }
 0x13a   : > { %p1153_p1 = por %p1152_p0, %p1151_p13 }
 0x13c   : > { %p1154_p2 = pnand %p1153_p1, %p1147_p10 }
 0x13e   : > { %1157 = shalt.err (!%p1154_p2)
}
 0x13f   : > { %s1211_s21 = smov 128   ;;  %s1212_s23 = smov 8  }
 0x140   : > { %1057 = dma.vmem_to_hbm [thread:$0]  (%p1273_p4), %s1417_s27, 2048, %s1415_s29, %s1424_s30, %s1211_s21, %s1211_s21, %s1212_s23  }
 0x141 PF: > { %p1063_p3 = scmp.ge.s32.totalorder %s1208_s17, 2  ;;  %s786_s26 = sand.u32 1, %s1188_s12  }
 0x142   : > { %s787_s15 = scalar_lea.sflag [#allocation3], %s786_s26 }
 0x143   : > { %p1060_p5 = pnand %p1063_p3, %p1280_p8 }
 0x145   : > { %1183 = dma.done.wait (!%p1060_p5), %s787_s15, 2048  }
 0x146   : > { %1185 = vsyncadd (!%p1060_p5), %s787_s15, 4294965248  ;;  %s16_s17 = sadd.s32 1, %s1208_s17   ;;  %s1476_s12 = smov %s1192_s13 }
 0x147   : > { %p13_p6 = scmp.ge.s32.totalorder %s16_s17, 4   ;;  %s1477_s13 = smov %s1196_s14 }
 0x148   : > { %s1478_s14 = smov %s1286_s25  ;;  %s1479_s15 = smov %s1204_s16 }
 0x149   : > { %s1480_s16 = smov %s1482_s20  ;;  %15 = sbr.rel (!%p13_p6) target bundleno = 4 (0x4), region = 74 }
 0x150   :  { %792 = vsyncpa [#allocation3], 1 }
 0x151   :  { %794 = vsyncpa [#allocation3 + $0x1], 1 }

</bundles_post_ra>
